<compile_context>
chip_gen: v7x
topology: tpu7x:2x2x1
jax: 0.10.0
libtpu: 0.0.40
codegen_flags: <defaults>
</compile_context>

<pallas_src>
import jax
import jax.numpy as jnp
from jax.experimental import pallas as pl
from jax.experimental.pallas import tpu as pltpu


def _rmse_partial_kernel(yhat_ref, y_ref, out_ref, diff_acc, y_acc):
    # grid = (n_split, n_p, n_q): n_split is "parallel", (n_p, n_q) are
    # "arbitrary" reduction axes accumulating into VMEM scratch.
    p = pl.program_id(1)
    q = pl.program_id(2)
    n_p = pl.num_programs(1)
    n_q = pl.num_programs(2)

    @pl.when(jnp.logical_and(p == 0, q == 0))
    def _():
        diff_acc[...] = jnp.zeros_like(diff_acc)
        y_acc[...] = jnp.zeros_like(y_acc)

    yv = y_ref[...].astype(jnp.float32)            # (tp, K, tq)
    d = yhat_ref[...].astype(jnp.float32) - yv     # (tp, K, tq)

    # Lane-wise partial sums per k (VPU adds only); the cross-lane reduce is
    # deferred to the epilogue below.
    diff_acc[...] += jnp.sum(d * d, axis=0)        # (K, tq)
    y_acc[...] += jnp.sum(yv * yv, axis=0)         # (K, tq)

    @pl.when(jnp.logical_and(p == n_p - 1, q == n_q - 1))
    def _():
        dsum = jnp.sum(diff_acc[...], axis=-1, keepdims=True)   # (K, 1)
        ysum = jnp.sum(y_acc[...], axis=-1, keepdims=True)      # (K, 1)
        k = dsum.shape[0]
        out_ref[...] = jnp.concatenate([dsum, ysum], axis=-1).reshape(1, k, 2)


def _choose_tiling(P, K, Q, itemsize, target_block_bytes=2 << 20):
    """Pick (n_split, tp, tq) so tp | (P // n_split), tq | Q, block ~ target."""
    # 2-way parallel split of P for v7x's second TensorCore; a size-2
    # "parallel" axis is a near-free serial loop on 1-TC chips (v5e/v6e).
    n_split = 2 if (P % 2 == 0 and P >= 2) else 1
    p_chunk = P // n_split

    # Q tiling: keep the full Q row unless it is too big AND tileable by 128.
    row_bytes = K * Q * itemsize
    if row_bytes <= target_block_bytes or Q % 128 != 0:
        tq = Q
    else:
        tq = 128
        cap = max(128, (target_block_bytes // max(1, K * itemsize)) // 128 * 128)
        c = (min(cap, Q) // 128) * 128
        while c >= 128:
            if Q % c == 0:
                tq = c
                break
            c -= 128

    # tp: largest exact divisor of p_chunk keeping the block near the target.
    block_row_bytes = K * tq * itemsize
    cap_tp = max(1, target_block_bytes // max(1, block_row_bytes))
    tp = 1
    c = min(cap_tp, p_chunk)
    while c >= 1:
        if p_chunk % c == 0:
            tp = c
            break
        c -= 1
    return n_split, tp, tq


@jax.jit
def rmse_loss(yhat, y):
    assert yhat.shape == y.shape and yhat.ndim == 6
    d0, d1, d2, K, d4, d5 = yhat.shape
    P = d0 * d1 * d2
    Q = d4 * d5

    # Copy-free reshape: (d0,d1,d2,K,d4,d5) -> (P, K, Q).  No transpose, no
    # extra HBM traffic before the kernel.
    yhat3 = yhat.reshape(P, K, Q)
    y3 = y.reshape(P, K, Q)

    itemsize = jnp.dtype(yhat.dtype).itemsize
    n_split, tp, tq = _choose_tiling(P, K, Q, itemsize)
    n_p = (P // n_split) // tp
    n_q = Q // tq

    block_bytes = tp * K * tq * itemsize
    scratch_bytes = 2 * K * tq * 4
    # 2 inputs x 2 pipeline buffers + scratch + slack for compiler temporaries.
    vmem_need = 4 * block_bytes + scratch_bytes + (8 << 20)
    vmem_limit = int(max(32 << 20, vmem_need))

    partials = pl.pallas_call(
        _rmse_partial_kernel,
        out_shape=jax.ShapeDtypeStruct((n_split, K, 2), jnp.float32),
        grid_spec=pltpu.PrefetchScalarGridSpec(
            num_scalar_prefetch=0,
            grid=(n_split, n_p, n_q),
            in_specs=[
                pl.BlockSpec((tp, K, tq), lambda s, p, q: (s * n_p + p, 0, q)),
                pl.BlockSpec((tp, K, tq), lambda s, p, q: (s * n_p + p, 0, q)),
            ],
            out_specs=pl.BlockSpec((1, K, 2), lambda s, p, q: (s, 0, 0)),
            scratch_shapes=[
                pltpu.VMEM((K, tq), jnp.float32),
                pltpu.VMEM((K, tq), jnp.float32),
            ],
        ),
        compiler_params=pltpu.CompilerParams(
            dimension_semantics=("parallel", "arbitrary", "arbitrary"),
            vmem_limit_bytes=vmem_limit,
        ),
    )(yhat3, y3)

    # Tiny epilogue in plain JAX: combine split partials, sqrt, ratio, sum.
    dd = jnp.sum(partials[:, :, 0], axis=0)   # (K,)  sum ||yhat - y||^2 per k
    yy = jnp.sum(partials[:, :, 1], axis=0)   # (K,)  sum ||y||^2 per k
    return jnp.sum(jnp.sqrt(dd) / jnp.sqrt(yy))


def rmse_loss_ref(yhat, y):
    diff = (yhat - y).astype(jnp.float32)
    yv = y.astype(jnp.float32)
    axes = (0, 1, 2, 4, 5)
    num = jnp.sqrt(jnp.sum(diff * diff, axis=axes))
    den = jnp.sqrt(jnp.sum(yv * yv, axis=axes))
    return jnp.sum(num / den)


if __name__ == "__main__":
    key = jax.random.PRNGKey(0)

    # Shapes consistent with the module's dim=(0,1,2,4,5) reduction.
    test_shapes = [
        (2, 2, 2, 4, 8, 128),     # small sanity case (grid (2,1,1))
        (8, 8, 4, 4, 16, 128),    # exercises multi-step accumulation (grid (2,2,1))
        (3, 1, 1, 2, 8, 128),     # odd P -> no parallel split
    ]

    for shape in test_shapes:
        key, k1, k2 = jax.random.split(key, 3)
        yhat = jax.random.normal(k1, shape, dtype=jnp.float32)
        y = jax.random.normal(k2, shape, dtype=jnp.float32)

        loss = jax.block_until_ready(rmse_loss(yhat, y))
        ref = rmse_loss_ref(yhat, y)
        assert jnp.allclose(loss, ref, rtol=1e-4, atol=1e-5), (shape, loss, ref)

    print("KERNEL_OK")
</pallas_src>

<mosaic_0001>
module attributes {stable_mosaic.version = 11 : i64} {
  func.func @_rmse_partial_kernel(%arg0: i32, %arg1: i32, %arg2: i32, %arg3: memref<4x4x1024xf32, #tpu.memory_space<vmem>>, %arg4: memref<4x4x1024xf32, #tpu.memory_space<vmem>>, %arg5: memref<1x4x2xf32, #tpu.memory_space<vmem>>, %arg6: memref<4x1024xf32, #tpu.memory_space<vmem>>, %arg7: memref<4x1024xf32, #tpu.memory_space<vmem>>) attributes {dimension_semantics = [#tpu.dimension_semantics<parallel>, #tpu.dimension_semantics<arbitrary>, #tpu.dimension_semantics<arbitrary>], iteration_bounds = array<i64: 2, 1, 1>, scalar_prefetch = 0 : i64, scratch_operands = 2 : i64, tpu.core_type = #tpu.core_type<tc>, window_params = [{transform_indices = @transform_0, window_bounds = array<i64: 4, 4, 1024>}, {transform_indices = @transform_1, window_bounds = array<i64: 4, 4, 1024>}, {transform_indices = @transform_2, window_bounds = array<i64: 1, 4, 2>}]} {
    %c0_i32 = arith.constant 0 : i32
    %0 = arith.cmpi eq, %arg1, %c0_i32 : i32
    %c0_i32_0 = arith.constant 0 : i32
    %1 = arith.cmpi eq, %arg2, %c0_i32_0 : i32
    %2 = arith.andi %0, %1 : i1
    %3 = arith.extui %2 : i1 to i32
    %c0_i32_1 = arith.constant 0 : i32
    %4 = arith.cmpi ne, %3, %c0_i32_1 : i32
    scf.if %4 {
      %cst_19 = arith.constant 0.000000e+00 : f32
      %23 = vector.broadcast %cst_19 : f32 to vector<4x1024xf32>
      %c0_20 = arith.constant 0 : index
      %c0_21 = arith.constant 0 : index
      %24 = vector.load %arg6[%c0_20, %c0_21] : memref<4x1024xf32, #tpu.memory_space<vmem>>, vector<4x1024xf32>
      tpu.vector_store %arg6[%c0_20, %c0_21], %23 {strides = array<i32>} : memref<4x1024xf32, #tpu.memory_space<vmem>>, vector<4x1024xf32>,
      %cst_22 = arith.constant 0.000000e+00 : f32
      %25 = vector.broadcast %cst_22 : f32 to vector<4x1024xf32>
      %c0_23 = arith.constant 0 : index
      %c0_24 = arith.constant 0 : index
      %26 = vector.load %arg7[%c0_23, %c0_24] : memref<4x1024xf32, #tpu.memory_space<vmem>>, vector<4x1024xf32>
      tpu.vector_store %arg7[%c0_23, %c0_24], %25 {strides = array<i32>} : memref<4x1024xf32, #tpu.memory_space<vmem>>, vector<4x1024xf32>,
    } else {
    }
    %c0 = arith.constant 0 : index
    %c0_2 = arith.constant 0 : index
    %c0_3 = arith.constant 0 : index
    %5 = vector.load %arg4[%c0, %c0_2, %c0_3] : memref<4x4x1024xf32, #tpu.memory_space<vmem>>, vector<4x4x1024xf32>
    %c0_4 = arith.constant 0 : index
    %c0_5 = arith.constant 0 : index
    %c0_6 = arith.constant 0 : index
    %6 = vector.load %arg3[%c0_4, %c0_5, %c0_6] : memref<4x4x1024xf32, #tpu.memory_space<vmem>>, vector<4x4x1024xf32>
    %7 = arith.subf %6, %5 : vector<4x4x1024xf32>
    %c0_7 = arith.constant 0 : index
    %c0_8 = arith.constant 0 : index
    %8 = vector.load %arg6[%c0_7, %c0_8] : memref<4x1024xf32, #tpu.memory_space<vmem>>, vector<4x1024xf32>
    %9 = arith.mulf %7, %7 : vector<4x4x1024xf32>
    %cst = arith.constant dense<0.000000e+00> : vector<4x1024xf32>
    %10 = vector.multi_reduction <add>, %9, %cst [0] : vector<4x4x1024xf32> to vector<4x1024xf32>
    %11 = arith.addf %8, %10 : vector<4x1024xf32>
    %c0_9 = arith.constant 0 : index
    %c0_10 = arith.constant 0 : index
    %12 = vector.load %arg6[%c0_9, %c0_10] : memref<4x1024xf32, #tpu.memory_space<vmem>>, vector<4x1024xf32>
    tpu.vector_store %arg6[%c0_9, %c0_10], %11 {strides = array<i32>} : memref<4x1024xf32, #tpu.memory_space<vmem>>, vector<4x1024xf32>,
    %c0_11 = arith.constant 0 : index
    %c0_12 = arith.constant 0 : index
    %13 = vector.load %arg7[%c0_11, %c0_12] : memref<4x1024xf32, #tpu.memory_space<vmem>>, vector<4x1024xf32>
    %14 = arith.mulf %5, %5 : vector<4x4x1024xf32>
    %cst_13 = arith.constant dense<0.000000e+00> : vector<4x1024xf32>
    %15 = vector.multi_reduction <add>, %14, %cst_13 [0] : vector<4x4x1024xf32> to vector<4x1024xf32>
    %16 = arith.addf %13, %15 : vector<4x1024xf32>
    %c0_14 = arith.constant 0 : index
    %c0_15 = arith.constant 0 : index
    %17 = vector.load %arg7[%c0_14, %c0_15] : memref<4x1024xf32, #tpu.memory_space<vmem>>, vector<4x1024xf32>
    tpu.vector_store %arg7[%c0_14, %c0_15], %16 {strides = array<i32>} : memref<4x1024xf32, #tpu.memory_space<vmem>>, vector<4x1024xf32>,
    %c0_i32_16 = arith.constant 0 : i32
    %18 = arith.cmpi eq, %arg1, %c0_i32_16 : i32
    %c0_i32_17 = arith.constant 0 : i32
    %19 = arith.cmpi eq, %arg2, %c0_i32_17 : i32
    %20 = arith.andi %18, %19 : i1
    %21 = arith.extui %20 : i1 to i32
    %c0_i32_18 = arith.constant 0 : i32
    %22 = arith.cmpi ne, %21, %c0_i32_18 : i32
    scf.if %22 {
      %c0_19 = arith.constant 0 : index
      %c0_20 = arith.constant 0 : index
      %23 = vector.load %arg6[%c0_19, %c0_20] : memref<4x1024xf32, #tpu.memory_space<vmem>>, vector<4x1024xf32>
      %cst_21 = arith.constant dense<0.000000e+00> : vector<4xf32>
      %24 = vector.multi_reduction <add>, %23, %cst_21 [1] : vector<4x1024xf32> to vector<4xf32>
      %25 = vector.shape_cast %24 : vector<4xf32> to vector<4x1xf32>
      %c0_22 = arith.constant 0 : index
      %c0_23 = arith.constant 0 : index
      %26 = vector.load %arg7[%c0_22, %c0_23] : memref<4x1024xf32, #tpu.memory_space<vmem>>, vector<4x1024xf32>
      %cst_24 = arith.constant dense<0.000000e+00> : vector<4xf32>
      %27 = vector.multi_reduction <add>, %26, %cst_24 [1] : vector<4x1024xf32> to vector<4xf32>
      %28 = vector.shape_cast %27 : vector<4xf32> to vector<4x1xf32>
      %29 = tpu.concatenate %25, %28 in 1 : vector<4x1xf32>, vector<4x1xf32> -> vector<4x2xf32>
      %30 = vector.shape_cast %29 : vector<4x2xf32> to vector<1x4x2xf32>
      %c0_25 = arith.constant 0 : index
      %c0_26 = arith.constant 0 : index
      %c0_27 = arith.constant 0 : index
      %31 = vector.load %arg5[%c0_25, %c0_26, %c0_27] : memref<1x4x2xf32, #tpu.memory_space<vmem>>, vector<1x4x2xf32>
      tpu.vector_store %arg5[%c0_25, %c0_26, %c0_27], %30 {strides = array<i32>} : memref<1x4x2xf32, #tpu.memory_space<vmem>>, vector<1x4x2xf32>,
    } else {
    }
    return
  }
  func.func @transform_0(%arg0: i32, %arg1: i32, %arg2: i32) -> (i32, i32, i32) {
    %c1_i32 = arith.constant 1 : i32
    %0 = arith.muli %arg0, %c1_i32 : i32
    %1 = arith.addi %0, %arg1 : i32
    %c0_i32 = arith.constant 0 : i32
    %c0_i32_0 = arith.constant 0 : i32
    return %1, %c0_i32, %arg2 : i32, i32, i32
  }
  func.func @transform_1(%arg0: i32, %arg1: i32, %arg2: i32) -> (i32, i32, i32) {
    %c1_i32 = arith.constant 1 : i32
    %0 = arith.muli %arg0, %c1_i32 : i32
    %1 = arith.addi %0, %arg1 : i32
    %c0_i32 = arith.constant 0 : i32
    %c0_i32_0 = arith.constant 0 : i32
    return %1, %c0_i32, %arg2 : i32, i32, i32
  }
  func.func @transform_2(%arg0: i32, %arg1: i32, %arg2: i32) -> (i32, i32, i32) {
    %c0_i32 = arith.constant 0 : i32
    %c0_i32_0 = arith.constant 0 : i32
    %c0_i32_1 = arith.constant 0 : i32
    return %arg0, %c0_i32, %c0_i32_0 : i32, i32, i32
  }
}

</mosaic_0001>

<bundles_post_ra>
// kernel: rmse_loss.1
= control target key start
LH: loop header
LB: loop body
LE: loop exit
PB: predicated region body
PF: predicated region fallthrough
CT: control target
= control target key end

     0   :  { %s843_s9 = smov 0   ;;  %s845_s10 = smov 0   ;;  %s1102_s0 = inlined_call_operand.vmem [shape: f32[8,4,1024], index: 0, kind: input, shape index: {}]   ;;  %s1103_s1 = inlined_call_operand.vmem [shape: f32[8,4,1024], index: 1, kind: input, shape index: {}]   ;;  %s1104_s2 = inlined_call_operand.vmem [shape: f32[2,4,2], index: 2, kind: output, shape index: {}]  }
   0x1   :  { %s847_s11 = smov 0  }
   0x2 LB: > { %s31_s12 = sadd.s32 1, %s822_s10  ;;  %p760_p0 = scmp.ge.s32.totalorder %s826_s11, 1  ;;  %s826_s11 = sphi %s847_s11, %s12_s11   ;;  %s822_s10 = sphi %s845_s10, %s1106_s10   ;;  %s818_s9 = sphi %s843_s9, %s1105_s9  }
   0x3   : > { %p33_p1 = scmp.ge.s32.totalorder %s31_s12, 2  ;;  %p167_p2 = scmp.lt.s32.totalorder %s826_s11, 3 }
   0x5   : > { %s1108_s12 = smov (%p33_p1, %s31_s12), 0  ;;  %p168_p3 = pnand %p760_p0, %p167_p2 }
   0x6   : > { %s761_s13 = sshll.u32 (!%p168_p3), %s818_s9, 2  ;;  %vm367_vm0 = vcmask (!%p168_p3), 1043456   ;;  %p233_p5 = scmp.lt.s32.totalorder (!%p168_p3), %s818_s9, 1  ;;  %vm664_vm1 = vcmask (!%p168_p3), 7168   ;;  %vm666_vm2 = vcmask (!%p168_p3), 11264  }
   0x7   : > { %171 = sbr.rel (%p168_p3) target bundleno = 233 (0xe9), region = 28  ;;  %p208_p4 = scmp.lt.s32.totalorder (!%p168_p3), %s761_s13, 7 }
   0xe   : > { %s1110_s13 = smov (!%p208_p4, %s761_s13), 7  ;;  %s1112_s9 = smov (!%p233_p5, %s818_s9), 1 }
   0xf   : > { %s770_s14 = sshll.u32 %s1110_s13, 5  ;;  %s767_s21 = sshll.u32 %s1112_s9, 2 }
  0x10   : > { %s229_s17 = scalar_lea.vmem %s1103_s1, %s770_s14  ;;  %s874_s20 = scalar_lea.vmem %s1102_s0, %s770_s14 }
  0x11   : > { %v251_v0 = vld [vmem:[%s229_s17] sm:$0xff]  ;;  %v252_v1 = vld [vmem:[%s229_s17 + $0x8] sm:$0xff]  ;;  %v253_v2 = vld [vmem:[%s229_s17 + $0x10] sm:$0xff]  ;;  %s236_s24 = scalar_lea.vmem %s1104_s2, %s767_s21 }
  0x12   : > { %v254_v3 = vld [vmem:[%s229_s17 + $0x18] sm:$0xff]  ;;  %v255_v4 = vld [vmem:[%s229_s17 + $0x20] sm:$0xff]  ;;  %v256_v5 = vld [vmem:[%s229_s17 + $0x28] sm:$0xff]  ;;  %v867_v6 = vmul.f32 %v251_v0, %v251_v0  ;;  %v869_v7 = vmul.f32 %v252_v1, %v252_v1  ;;  %v876_v11 = vmul.f32 %v253_v2, %v253_v2 }
  0x13   : > { %v257_v8 = vld [vmem:[%s229_s17 + $0x30] sm:$0xff]  ;;  %v258_v9 = vld [vmem:[%s229_s17 + $0x38] sm:$0xff]  ;;  %v259_v10 = vld [vmem:[%s229_s17 + $0x40] sm:$0xff]  ;;  %v878_v12 = vmul.f32 %v254_v3, %v254_v3  ;;  %v880_v13 = vmul.f32 %v255_v4, %v255_v4  ;;  %v882_v17 = vmul.f32 %v256_v5, %v256_v5 }
  0x14   : > { %v260_v14 = vld [vmem:[%s229_s17 + $0x48] sm:$0xff]  ;;  %v261_v15 = vld [vmem:[%s229_s17 + $0x50] sm:$0xff]  ;;  %v262_v16 = vld [vmem:[%s229_s17 + $0x58] sm:$0xff]  ;;  %v884_v18 = vmul.f32 %v257_v8, %v257_v8  ;;  %v886_v19 = vmul.f32 %v258_v9, %v258_v9  ;;  %v888_v20 = vmul.f32 %v259_v10, %v259_v10  ;;  %v484_v27 = vcombine.high %v867_v6, %v867_v6 }
  0x15   : > { %v263_v21 = vld [vmem:[%s229_s17 + $0x60] sm:$0xff]  ;;  %v264_v22 = vld [vmem:[%s229_s17 + $0x68] sm:$0xff]  ;;  %v265_v23 = vld [vmem:[%s229_s17 + $0x70] sm:$0xff]  ;;  %v890_v24 = vmul.f32 %v260_v14, %v260_v14  ;;  %v892_v25 = vmul.f32 %v261_v15, %v261_v15  ;;  %v894_v26 = vmul.f32 %v262_v16, %v262_v16  ;;  %v485_v34 = vcombine.high %v869_v7, %v869_v7 }
  0x16   : > { %v266_v28 = vld [vmem:[%s229_s17 + $0x78] sm:$0xff]  ;;  %v267_v29 = vld [vmem:[%s874_s20] sm:$0xff]  ;;  %v268_v30 = vld [vmem:[%s874_s20 + $0x8] sm:$0xff]  ;;  %v900_v31 = vmul.f32 %v263_v21, %v263_v21  ;;  %v902_v32 = vmul.f32 %v264_v22, %v264_v22  ;;  %v904_v33 = vmul.f32 %v265_v23, %v265_v23  ;;  %v486_v41 = vcombine.high %v876_v11, %v876_v11 }
  0x17   : > { %v269_v35 = vld [vmem:[%s874_s20 + $0x10] sm:$0xff]  ;;  %v270_v36 = vld [vmem:[%s874_s20 + $0x18] sm:$0xff]  ;;  %v271_v37 = vld [vmem:[%s874_s20 + $0x20] sm:$0xff]  ;;  %v283_v38 = vsub.f32 %v267_v29, %v251_v0  ;;  %v284_v39 = vsub.f32 %v268_v30, %v252_v1  ;;  %v911_v40 = vmul.f32 %v266_v28, %v266_v28  ;;  %v487_v48 = vcombine.high %v878_v12, %v878_v12 }
  0x18   : > { %v272_v42 = vld [vmem:[%s874_s20 + $0x28] sm:$0xff]  ;;  %v273_v43 = vld [vmem:[%s874_s20 + $0x30] sm:$0xff]  ;;  %v274_v44 = vld [vmem:[%s874_s20 + $0x38] sm:$0xff]  ;;  %v285_v45 = vsub.f32 %v269_v35, %v253_v2  ;;  %v286_v46 = vsub.f32 %v270_v36, %v254_v3  ;;  %v287_v47 = vsub.f32 %v271_v37, %v255_v4 }
  0x19   : > { %v275_v49 = vld [vmem:[%s874_s20 + $0x40] sm:$0xff]  ;;  %v276_v50 = vld [vmem:[%s874_s20 + $0x48] sm:$0xff]  ;;  %v277_v51 = vld [vmem:[%s874_s20 + $0x50] sm:$0xff]  ;;  %v288_v52 = vsub.f32 %v272_v42, %v256_v5  ;;  %v289_v53 = vsub.f32 %v273_v43, %v257_v8  ;;  %v290_v54 = vsub.f32 %v274_v44, %v258_v9  ;;  %v303_v55 = vmul.f32 %v283_v38, %v283_v38 }
  0x1a   : > { %v278_v56 = vld [vmem:[%s874_s20 + $0x58] sm:$0xff]  ;;  %v279_v57 = vld [vmem:[%s874_s20 + $0x60] sm:$0xff]  ;;  %v280_v58 = vld [vmem:[%s874_s20 + $0x68] sm:$0xff]  ;;  %v291_v59 = vsub.f32 %v275_v49, %v259_v10  ;;  %v292_v60 = vsub.f32 %v276_v50, %v260_v14  ;;  %v293_v61 = vsub.f32 %v277_v51, %v261_v15  ;;  %v304_v62 = vmul.f32 %v284_v39, %v284_v39 }
  0x1b   : > { %v281_v63 = vld [vmem:[%s874_s20 + $0x70] sm:$0xff]  ;;  %v282_v0 = vld [vmem:[%s874_s20 + $0x78] sm:$0xff]  ;;  %v294_v1 = vsub.f32 %v278_v56, %v262_v16  ;;  %v295_v2 = vsub.f32 %v279_v57, %v263_v21  ;;  %v296_v3 = vsub.f32 %v280_v58, %v264_v22  ;;  %v928_v4 = vmul.f32 %v285_v45, %v285_v45 }
  0x1c   : > { %v297_v29 = vsub.f32 %v281_v63, %v265_v23  ;;  %v298_v30 = vsub.f32 %v282_v0, %v266_v28  ;;  %v930_v5 = vmul.f32 %v286_v46, %v286_v46  ;;  %v307_v8 = vmul.f32 %v287_v47, %v287_v47 }
  0x1d   : > { %v308_v9 = vmul.f32 %v288_v52, %v288_v52  ;;  %v309_v35 = vmul.f32 %v289_v53, %v289_v53  ;;  %v932_v36 = vmul.f32 %v290_v54, %v290_v54  ;;  %v311_v10 = vmul.f32 %v291_v59, %v291_v59 }
  0x1e   : > { %v312_v14 = vmul.f32 %v292_v60, %v292_v60  ;;  %v313_v15 = vmul.f32 %v293_v61, %v293_v61  ;;  %v934_v37 = vmul.f32 %v294_v1, %v294_v1  ;;  %v315_v38 = vmul.f32 %v295_v2, %v295_v2 }
  0x1f   : > { %v316_v16 = vmul.f32 %v296_v3, %v296_v3  ;;  %v317_v21 = vmul.f32 %v297_v29, %v297_v29  ;;  %v936_v22 = vmul.f32 %v298_v30, %v298_v30  ;;  %v335_v39 = vcombine.high %v303_v55, %v303_v55 }
  0x20   : > { %v336_v23 = vcombine.high %v304_v62, %v304_v62  ;;  %v337_v28 = vcombine.high %v928_v4, %v928_v4  ;;  %v338_v42 = vcombine.high %v930_v5, %v930_v5  ;;  %v339_v43 = vcombine.high %v307_v8, %v307_v8 }
  0x21   : > { %v340_v44 = vcombine.high %v308_v9, %v308_v9  ;;  %v341_v45 = vcombine.high %v309_v35, %v309_v35  ;;  %v342_v46 = vcombine.high %v932_v36, %v932_v36  ;;  %v343_v47 = vcombine.high %v311_v10, %v311_v10 }
  0x22   : > { %v344_v49 = vcombine.high %v312_v14, %v312_v14  ;;  %v345_v50 = vcombine.high %v313_v15, %v313_v15  ;;  %v346_v51 = vcombine.high %v934_v37, %v934_v37  ;;  %v347_v52 = vcombine.high %v315_v38, %v315_v38 }
  0x23   : > { %v348_v53 = vcombine.high %v316_v16, %v316_v16  ;;  %v349_v54 = vcombine.high %v317_v21, %v317_v21  ;;  %v350_v56 = vcombine.high %v936_v22, %v936_v22  ;;  %v368_v57 = vsel %vm367_vm0, %v303_v55, 0.0 }
  0x24   : > { %v369_v58 = vsel %vm367_vm0, %v307_v8, 0.0  ;;  %v371_v59 = vsel %vm367_vm0, %v311_v10, 0.0  ;;  %v373_v60 = vsel %vm367_vm0, %v315_v38, 0.0  ;;  %v375_v61 = vsel %vm367_vm0, %v335_v39, 0.0 }
  0x25   : > { %v370_v63 = vadd.f32 %v369_v58, %v368_v57  ;;  %v376_v0 = vsel %vm367_vm0, %v339_v43, 0.0  ;;  %v378_v1 = vsel %vm367_vm0, %v343_v47, 0.0  ;;  %v380_v2 = vsel %vm367_vm0, %v347_v52, 0.0 }
  0x26   : > { %v377_v3 = vadd.f32 %v376_v0, %v375_v61  ;;  %v382_v29 = vsel %vm367_vm0, %v304_v62, 0.0  ;;  %v383_v55 = vsel %vm367_vm0, %v308_v9, 0.0  ;;  %v385_v30 = vsel %vm367_vm0, %v312_v14, 0.0 }
  0x27   : > { %v372_v8 = vadd.f32 %v371_v59, %v370_v63  ;;  %v384_v10 = vadd.f32 %v383_v55, %v382_v29  ;;  %v387_v38 = vsel %vm367_vm0, %v316_v16, 0.0  ;;  %v389_v39 = vsel %vm367_vm0, %v336_v23, 0.0 }
  0x28   : > { %v379_v57 = vadd.f32 %v378_v1, %v377_v3  ;;  %v390_v43 = vsel %vm367_vm0, %v340_v44, 0.0  ;;  %v392_v47 = vsel %vm367_vm0, %v344_v49, 0.0  ;;  %v394_v52 = vsel %vm367_vm0, %v348_v53, 0.0 }
  0x29   : > { %v374_v58 = vadd.f32 %v373_v60, %v372_v8  ;;  %v386_v61 = vadd.f32 %v385_v30, %v384_v10  ;;  %v391_v62 = vadd.f32 %v390_v43, %v389_v39  ;;  %v396_v9 = vsel %vm367_vm0, %v928_v4, 0.0 }
  0x2a   : > { %v381_v14 = vadd.f32 %v380_v2, %v379_v57  ;;  %v397_v59 = vsel %vm367_vm0, %v309_v35, 0.0  ;;  %v399_v16 = vsel %vm367_vm0, %v313_v15, 0.0  ;;  %v401_v23 = vsel %vm367_vm0, %v317_v21, 0.0 }
  0x2b   : > { %v388_v63 = vadd.f32 %v387_v38, %v386_v61  ;;  %v393_v0 = vadd.f32 %v392_v47, %v391_v62  ;;  %v398_v44 = vadd.f32 %v397_v59, %v396_v9  ;;  %v403_v49 = vsel %vm367_vm0, %v337_v28, 0.0 }
  0x2c   : > { %v404_v53 = vsel %vm367_vm0, %v341_v45, 0.0  ;;  %v406_v60 = vsel %vm367_vm0, %v345_v50, 0.0  ;;  %v408_v1 = vsel %vm367_vm0, %v349_v54, 0.0  ;;  %v410_v4 = vsel %vm367_vm0, %v930_v5, 0.0 }
  0x2d   : > { %v395_v2 = vadd.f32 %v394_v52, %v393_v0  ;;  %v400_v35 = vadd.f32 %v399_v16, %v398_v44  ;;  %v405_v3 = vadd.f32 %v404_v53, %v403_v49  ;;  %v411_v15 = vsel %vm367_vm0, %v932_v36, 0.0 }
  0x2e   : > { %v412_v21 = vadd.f32 %v411_v15, %v410_v4  ;;  %v413_v29 = vsel %vm367_vm0, %v934_v37, 0.0  ;;  %v415_v28 = vsel %vm367_vm0, %v936_v22, 0.0  ;;  %v417_v45 = vsel %vm367_vm0, %v338_v42, 0.0 }
  0x2f   : > { %v402_v50 = vadd.f32 %v401_v23, %v400_v35  ;;  %v407_v54 = vadd.f32 %v406_v60, %v405_v3  ;;  %v418_v55 = vsel %vm367_vm0, %v342_v46, 0.0  ;;  %v420_v5 = vsel %vm367_vm0, %v346_v51, 0.0 }
  0x30   : > { %v414_v30 = vadd.f32 %v413_v29, %v412_v21  ;;  %v419_v8 = vadd.f32 %v418_v55, %v417_v45  ;;  %v422_v10 = vsel %vm367_vm0, %v350_v56, 0.0  ;;  %v432_v36 = vcombine.low %v374_v58, %v381_v14 }
  0x31   : > { %v409_v38 = vadd.f32 %v408_v1, %v407_v54  ;;  %v433_v39 = vcombine.low %v388_v63, %v395_v2  ;;  %v772_v57 = vcombine.low %v381_v14, %v381_v14  ;;  %v773_v37 = vcombine.low %v395_v2, %v395_v2 }
  0x32   : > { %v416_v43 = vadd.f32 %v415_v28, %v414_v30  ;;  %v421_v47 = vadd.f32 %v420_v5, %v419_v8  ;;  %v614_v22 = vsel %vm367_vm0, %v432_v36, 0.0  ;;  %v488_v42 = vcombine.high %v880_v13, %v880_v13 }
  0x33   : > { %v434_v52 = vcombine.low %v402_v50, %v409_v38  ;;  %v774_v46 = vcombine.low %v409_v38, %v409_v38  ;;  %v615_v51 = vsel %vm367_vm0, %v772_v57, 0.0  ;;  %v617_v61 = vsel %vm367_vm0, %v433_v39, 0.0 }
  0x34   : > { %v423_v62 = vadd.f32 %v422_v10, %v421_v47  ;;  %v616_v56 = vadd.f32 %v615_v51, %v614_v22  ;;  %v619_v58 = vsel %vm367_vm0, %v773_v37, 0.0  ;;  %v489_v9 = vcombine.high %v882_v17, %v882_v17 }
  0x35   : > { %v621_v14 = vsel %vm367_vm0, %v434_v52, 0.0  ;;  %v623_v59 = vsel %vm367_vm0, %v774_v46, 0.0  ;;  %v490_v16 = vcombine.high %v884_v18, %v884_v18  ;;  %v491_v23 = vcombine.high %v886_v19, %v886_v19 }
  0x36   : > { %v435_v63 = vcombine.low %v416_v43, %v423_v62  ;;  %v775_v0 = vcombine.low %v423_v62, %v423_v62  ;;  %v618_v44 = vadd.f32 %v617_v61, %v616_v56  ;;  %v492_v49 = vcombine.high %v888_v20, %v888_v20 }
  0x37   : > { %v493_v53 = vcombine.high %v890_v24, %v890_v24  ;;  %v494_v60 = vcombine.high %v892_v25, %v892_v25  ;;  %v495_v1 = vcombine.high %v894_v26, %v894_v26  ;;  %v496_v4 = vcombine.high %v900_v31, %v900_v31 }
  0x38   : > { %v620_v2 = vadd.f32 %v619_v58, %v618_v44  ;;  %v625_v35 = vsel %vm367_vm0, %v435_v63, 0.0  ;;  %v627_v3 = vsel %vm367_vm0, %v775_v0, 0.0  ;;  %v497_v15 = vcombine.high %v902_v32, %v902_v32 }
  0x39   : > { %v498_v21 = vcombine.high %v904_v33, %v904_v33  ;;  %v516_v29 = vsel %vm367_vm0, %v867_v6, 0.0  ;;  %v517_v28 = vsel %vm367_vm0, %v880_v13, 0.0  ;;  %v519_v45 = vsel %vm367_vm0, %v888_v20, 0.0 }
  0x3a   : > { %v622_v50 = vadd.f32 %v621_v14, %v620_v2  ;;  %v499_v54 = vcombine.high %v911_v40, %v911_v40  ;;  %v518_v55 = vadd.f32 %v517_v28, %v516_v29  ;;  %v523_v5 = vsel %vm367_vm0, %v484_v27, 0.0 }
  0x3b   : > { %v521_v30 = vsel %vm367_vm0, %v900_v31, 0.0  ;;  %v524_v8 = vsel %vm367_vm0, %v488_v42, 0.0  ;;  %v526_v13 = vsel %vm367_vm0, %v492_v49, 0.0  ;;  %v530_v20 = vsel %vm367_vm0, %v869_v7, 0.0 }
  0x3c   : > { %v624_v10 = vadd.f32 %v623_v59, %v622_v50  ;;  %v520_v36 = vadd.f32 %v519_v45, %v518_v55  ;;  %v525_v38 = vadd.f32 %v524_v8, %v523_v5  ;;  %v531_v39 = vsel %vm367_vm0, %v882_v17, 0.0 }
  0x3d   : > { %v528_v6 = vsel %vm367_vm0, %v496_v4, 0.0  ;;  %v532_v57 = vadd.f32 %v531_v39, %v530_v20  ;;  %v533_v27 = vsel %vm367_vm0, %v890_v24, 0.0  ;;  %v537_v31 = vsel %vm367_vm0, %v485_v34, 0.0 }
  0x3e   : > { %v626_v37 = vadd.f32 %v625_v35, %v624_v10  ;;  %v527_v43 = vadd.f32 %v526_v13, %v525_v38  ;;  %v535_v47 = vsel %vm367_vm0, %v902_v32, 0.0  ;;  %v538_v22 = vsel %vm367_vm0, %v489_v9, 0.0 }
  0x3f   : > { %v522_v42 = vadd.f32 %v521_v30, %v520_v36  ;;  %v534_v17 = vadd.f32 %v533_v27, %v532_v57  ;;  %v539_v52 = vadd.f32 %v538_v22, %v537_v31  ;;  %v540_v46 = vsel %vm367_vm0, %v493_v53, 0.0 }
  0x40   : > { %v628_v51 = vadd.f32 %v627_v3, %v626_v37  ;;  %v542_v24 = vsel %vm367_vm0, %v497_v15, 0.0  ;;  %v544_v7 = vsel %vm367_vm0, %v876_v11, 0.0  ;;  %v545_v34 = vsel %vm367_vm0, %v884_v18, 0.0 }
  0x41   : > { %v529_v61 = vadd.f32 %v528_v6, %v527_v43  ;;  %v541_v62 = vadd.f32 %v540_v46, %v539_v52  ;;  %v546_v56 = vadd.f32 %v545_v34, %v544_v7  ;;  %v547_v32 = vsel %vm367_vm0, %v892_v25, 0.0 }
  0x42   : > { %629 = vadd.xlane.f32.xlu0 %v628_v51  ;;  %v536_v58 = vadd.f32 %v535_v47, %v534_v17  ;;  %v551_v9 = vsel %vm367_vm0, %v486_v41, 0.0  ;;  %v552_v14 = vsel %vm367_vm0, %v490_v16, 0.0  ;;  %v554_v59 = vsel %vm367_vm0, %v494_v60, 0.0 }
  0x43   : > { %v543_v63 = vadd.f32 %v542_v24, %v541_v62  ;;  %v548_v0 = vadd.f32 %v547_v32, %v546_v56  ;;  %v549_v18 = vsel %vm367_vm0, %v904_v33, 0.0  ;;  %v553_v44 = vadd.f32 %v552_v14, %v551_v9 }
  0x44   : > { %v556_v49 = vsel %vm367_vm0, %v498_v21, 0.0  ;;  %v558_v25 = vsel %vm367_vm0, %v878_v12, 0.0  ;;  %v559_v11 = vsel %vm367_vm0, %v886_v19, 0.0  ;;  %v561_v41 = vsel %vm367_vm0, %v894_v26, 0.0 }
  0x45   : > { %v555_v16 = vadd.f32 %v554_v59, %v553_v44  ;;  %v560_v53 = vadd.f32 %v559_v11, %v558_v25  ;;  %v563_v60 = vsel %vm367_vm0, %v911_v40, 0.0  ;;  %v565_v33 = vsel %vm367_vm0, %v487_v48, 0.0 }
  0x46   : > { %v550_v4 = vadd.f32 %v549_v18, %v548_v0  ;;  %v566_v2 = vsel %vm367_vm0, %v491_v23, 0.0  ;;  %v568_v35 = vsel %vm367_vm0, %v495_v1, 0.0  ;;  %v580_v3 = vcombine.low %v522_v42, %v529_v61 }
  0x47   : > { %v557_v26 = vadd.f32 %v556_v49, %v555_v16  ;;  %v562_v15 = vadd.f32 %v561_v41, %v560_v53  ;;  %v567_v21 = vadd.f32 %v566_v2, %v565_v33  ;;  %v581_v29 = vcombine.low %v536_v58, %v543_v63 }
  0x48   : > { %v570_v40 = vsel %vm367_vm0, %v499_v54, 0.0  ;;  %v776_v28 = vcombine.low %v529_v61, %v529_v61  ;;  %v777_v45 = vcombine.low %v543_v63, %v543_v63  ;;  %v647_v12 = vsel %vm367_vm0, %v580_v3, 0.0 }
  0x49   : > { %v569_v48 = vadd.f32 %v568_v35, %v567_v21  ;;  %v564_v50 = vadd.f32 %v563_v60, %v562_v15  ;;  %v582_v55 = vcombine.low %v550_v4, %v557_v26  ;;  %v650_v23 = vsel %vm367_vm0, %v581_v29, 0.0 }
  0x4a   : > { %v648_v19 = vsel %vm367_vm0, %v776_v28, 0.0  ;;  %v778_v30 = vcombine.low %v557_v26, %v557_v26  ;;  %v652_v8 = vsel %vm367_vm0, %v777_v45, 0.0 }
  0x4b   : > { %v571_v5 = vadd.f32 %v570_v40, %v569_v48  ;;  %v649_v1 = vadd.f32 %v648_v19, %v647_v12  ;;  %v654_v20 = vsel %vm367_vm0, %v582_v55, 0.0 }
  0x4c   : > { %v656_v38 = vsel %vm367_vm0, %v778_v30, 0.0 }
  0x4d   : > { %v651_v13 = vadd.f32 %v650_v23, %v649_v1  ;;  %v583_v54 = vcombine.low %v564_v50, %v571_v5  ;;  %v779_v36 = vcombine.low %v571_v5, %v571_v5 }
  0x4f   : > { %v653_v10 = vadd.f32 %v652_v8, %v651_v13  ;;  %v658_v6 = vsel %vm367_vm0, %v583_v54, 0.0  ;;  %v660_v27 = vsel %vm367_vm0, %v779_v36, 0.0 }
  0x51   : > { %v655_v39 = vadd.f32 %v654_v20, %v653_v10 }
  0x53   : > { %v657_v57 = vadd.f32 %v656_v38, %v655_v39 }
  0x55   : > { %v659_v31 = vadd.f32 %v658_v6, %v657_v57 }
  0x57   : > { %v661_v37 = vadd.f32 %v660_v27, %v659_v31 }
  0x59   : > { %662 = vadd.xlane.f32.xlu0 %v661_v37 }
  0xcf   : > { %v630_v43 = vpop.xlane.xlu0 %629 }
  0xe6   : > { %v663_v47 = vpop.xlane.xlu0 %662 }
  0xe7   : > { %v665_v22 = vsel %vm664_vm1, %v630_v43, %v663_v47 }
  0xe8   : > { %667 = vst.msk [vmem:[%s236_s24] sm:$0xf] %vm666_vm2, %v665_v22 }
  0xe9 PF: > { %s12_s11 = sadd.s32 1, %s826_s11   ;;  %s1105_s9 = smov %s822_s10 }
  0xea   : > { %p9_p6 = scmp.ge.s32.totalorder %s12_s11, 4   ;;  %s1106_s10 = smov %s1108_s12 }
  0xec   :  { %11 = sbr.rel (!%p9_p6) target bundleno = 2 (0x2), region = 69 }

</bundles_post_ra>
